<compile_context>
chip_gen: v6e
topology: v6e:2x2x1
jax: 0.10.0
libtpu: 0.0.40
codegen_flags: <defaults>
</compile_context>

<pallas_src>
import math
import functools
import numpy as np

import jax
import jax.numpy as jnp
from jax.experimental import pallas as pl
from jax.experimental.pallas import tpu as pltpu

# F.rrelu in eval / functional mode uses the fixed negative slope (lower+upper)/2
RRELU_SLOPE = (1.0 / 8.0 + 1.0 / 3.0) / 2.0
_L2_EPS_SQ = 1e-24  # (1e-12)^2, matches F.normalize eps on the norm


def _round_up(x, m):
    return ((x + m - 1) // m) * m


# ----------------------------------------------------------------------------
# Pallas kernels
# ----------------------------------------------------------------------------
def _l2norm_kernel(x_ref, o_ref):
    # F.normalize(x, p=2, dim=1): x / max(||x||_2, eps)  == x * rsqrt(max(ss, eps^2))
    x = x_ref[...].astype(jnp.float32)
    ss = jnp.sum(x * x, axis=-1, keepdims=True)
    o_ref[...] = (x * jax.lax.rsqrt(jnp.maximum(ss, _L2_EPS_SQ))).astype(o_ref.dtype)


def l2_normalize(x, tile_m=256):
    """Row-tiled L2 normalize. Pads rows so blocks satisfy the (8,128) rule."""
    m, n = x.shape
    m8 = _round_up(m, 8)
    if m8 <= tile_m:
        block_m, m_pad = m8, m8
    else:
        block_m = tile_m
        m_pad = _round_up(m, tile_m)
    xp = jnp.pad(x, ((0, m_pad - m), (0, 0))) if m_pad != m else x
    out = pl.pallas_call(
        _l2norm_kernel,
        out_shape=jax.ShapeDtypeStruct((m_pad, n), jnp.float32),
        grid=(m_pad // block_m,),
        in_specs=[pl.BlockSpec((block_m, n), lambda i: (i, 0))],
        out_specs=pl.BlockSpec((block_m, n), lambda i: (i, 0)),
        compiler_params=pltpu.CompilerParams(dimension_semantics=("parallel",)),
    )(xp)
    return out[:m] if m_pad != m else out


def _fused_step_kernel(agg_ref, hprev_ref, wn_ref, wrz_ref, brz_ref,
                       win_ref, bin_ref, whn_ref, bhn_ref, o_ref):
    """Fused per-timestep update for one (tile_m, h_dim) entity tile.

    y   = rrelu(agg @ W_neighbor)              (degree norm already in agg)
    x   = l2norm_rows(y)                       (== F.normalize(current_h))
    GRU (PyTorch nn.GRUCell semantics):
        r,z from a single merged [x, h] @ W_rz matmul (K = 2*h_dim)
        n   = tanh(x @ W_in + b_in + r * (h @ W_hn + b_hn))
        h'  = (1 - z) * n + z * h
    out = l2norm_rows(h')                      (== F.normalize(h_0))
    """
    agg = agg_ref[...].astype(jnp.float32)
    hprev = hprev_ref[...].astype(jnp.float32)
    hd = agg.shape[-1]

    # --- RGCN apply: matmul on MXU (bf16 in, f32 acc), rrelu on VPU ----------
    y = jnp.dot(agg.astype(jnp.bfloat16), wn_ref[...],
                preferred_element_type=jnp.float32)
    y = jnp.where(y > 0, y, RRELU_SLOPE * y)

    # --- F.normalize(current_h) ---------------------------------------------
    ss = jnp.sum(y * y, axis=-1, keepdims=True)
    x = y * jax.lax.rsqrt(jnp.maximum(ss, _L2_EPS_SQ))

    # --- GRU cell -------------------------------------------------------------
    xh = jnp.concatenate([x, hprev], axis=-1).astype(jnp.bfloat16)      # (tm, 2h)
    g_rz = jnp.dot(xh, wrz_ref[...],
                   preferred_element_type=jnp.float32) + brz_ref[...]    # (tm, 2h)
    r = jax.nn.sigmoid(g_rz[:, :hd])
    z = jax.nn.sigmoid(g_rz[:, hd:])
    gi_n = jnp.dot(x.astype(jnp.bfloat16), win_ref[...],
                   preferred_element_type=jnp.float32) + bin_ref[...]
    gh_n = jnp.dot(hprev.astype(jnp.bfloat16), whn_ref[...],
                   preferred_element_type=jnp.float32) + bhn_ref[...]
    n = jnp.tanh(gi_n + r * gh_n)
    h_new = (1.0 - z) * n + z * hprev

    # --- F.normalize(h_0) ------------------------------------------------------
    ss2 = jnp.sum(h_new * h_new, axis=-1, keepdims=True)
    o_ref[...] = (h_new * jax.lax.rsqrt(jnp.maximum(ss2, _L2_EPS_SQ))).astype(o_ref.dtype)


def fused_rgcn_gru_step(agg, h_prev, wn, wrz, brz, win, bin_, whn, bhn,
                        tile_m=256):
    m, hd = agg.shape          # m is pre-padded to a multiple of tile_m by the caller
    grid = (m // tile_m,)
    return pl.pallas_call(
        _fused_step_kernel,
        out_shape=jax.ShapeDtypeStruct((m, hd), jnp.float32),
        grid=grid,
        in_specs=[
            pl.BlockSpec((tile_m, hd), lambda i: (i, 0)),        # agg (f32)
            pl.BlockSpec((tile_m, hd), lambda i: (i, 0)),        # h_prev (f32)
            pl.BlockSpec((hd, hd), lambda i: (0, 0)),            # W_neighbor (bf16)
            pl.BlockSpec((2 * hd, 2 * hd), lambda i: (0, 0)),    # W_rz stacked (bf16)
            pl.BlockSpec((1, 2 * hd), lambda i: (0, 0)),         # b_rz = b_i + b_h (f32)
            pl.BlockSpec((hd, hd), lambda i: (0, 0)),            # W_in (bf16)
            pl.BlockSpec((1, hd), lambda i: (0, 0)),             # b_in (f32)
            pl.BlockSpec((hd, hd), lambda i: (0, 0)),            # W_hn (bf16)
            pl.BlockSpec((1, hd), lambda i: (0, 0)),             # b_hn (f32)
        ],
        out_specs=pl.BlockSpec((tile_m, hd), lambda i: (i, 0)),
        compiler_params=pltpu.CompilerParams(dimension_semantics=("parallel",)),
    )(agg, h_prev, wn, wrz, brz, win, bin_, whn, bhn)


# ----------------------------------------------------------------------------
# Per-timestep step = graph aggregation glue + fused Pallas kernel (jitted once)
# ----------------------------------------------------------------------------
def _recurrent_step(h_pad, src, dst, etype, emb_rel,
                    wn, wrz, brz, win, bin_, whn, bhn, *, tile_m):
    # TODO(synk): a dst-sorted Pallas segment-sum kernel would replace this XLA
    # scatter-add for large edge counts; kept as JAX glue here (data-dependent scatter).
    m_pad, hd = h_pad.shape
    deg = jnp.zeros((m_pad,), jnp.float32).at[dst].add(1.0)
    inv_deg = jnp.where(deg > 0, 1.0 / jnp.maximum(deg, 1.0), 0.0)
    # degree norm folded into the (lane-dense) edge messages:
    msg = (h_pad[src] + emb_rel[etype]) * inv_deg[dst][:, None]
    agg = jnp.zeros((m_pad, hd), jnp.float32).at[dst].add(msg)
    return fused_rgcn_gru_step(agg, h_pad, wn, wrz, brz, win, bin_, whn, bhn,
                               tile_m=tile_m)


# ----------------------------------------------------------------------------
# Parameter init helpers (deterministic, mirrors the torch inits in __init__)
# ----------------------------------------------------------------------------
def xavier_normal(key, shape, gain=1.0):
    fan_out, fan_in = shape
    std = gain * math.sqrt(2.0 / (fan_in + fan_out))
    return std * jax.random.normal(key, shape, jnp.float32)


def xavier_uniform(key, shape, gain=1.0):
    fan_out, fan_in = shape
    a = gain * math.sqrt(6.0 / (fan_in + fan_out))
    return jax.random.uniform(key, shape, jnp.float32, -a, a)


def uniform_pm(key, shape, bound):
    return jax.random.uniform(key, shape, jnp.float32, -bound, bound)


# ----------------------------------------------------------------------------
# RecurrentRGCN (GRU branch) built on the Pallas kernels above
# ----------------------------------------------------------------------------
class RecurrentRGCNPallas:
    def __init__(self, num_ents, num_rels, h_dim, key, tile_m=256):
        self.num_ents = num_ents
        self.num_rels = num_rels
        self.h_dim = h_dim
        self.tile_m = tile_m
        self.m_pad = _round_up(num_ents, tile_m)
        ks = jax.random.split(key, 12)

        # emb_rel: xavier_normal_, dynamic_emb: normal_
        self.emb_rel = xavier_normal(ks[0], (2 * num_rels, h_dim))
        self.dynamic_emb = jax.random.normal(ks[1], (num_ents, h_dim), jnp.float32)

        # RGCN layer weight (single hidden layer), stored bf16 for the MXU
        self.w_neighbor = xavier_uniform(ks[2], (h_dim, h_dim))
        self.wn_bf16 = self.w_neighbor.astype(jnp.bfloat16)

        # query_encoder = Linear(num_rels*2, h_dim) + ReLU  (pre-transposed weight)
        bound_q = 1.0 / math.sqrt(2 * num_rels)
        self.q_w_t = uniform_pm(ks[3], (2 * num_rels, h_dim), bound_q)
        self.q_b = uniform_pm(ks[4], (h_dim,), bound_q)

        # entity_cell = nn.GRUCell(h_dim, h_dim)   (gate order r, z, n)
        bound_g = 1.0 / math.sqrt(h_dim)
        w_ih_t = uniform_pm(ks[5], (h_dim, 3 * h_dim), bound_g)
        w_hh_t = uniform_pm(ks[6], (h_dim, 3 * h_dim), bound_g)
        b_ih = uniform_pm(ks[7], (3 * h_dim,), bound_g)
        b_hh = uniform_pm(ks[8], (3 * h_dim,), bound_g)
        h2 = 2 * h_dim
        # r/z gates: merged K=2h matmul with stacked weights + summed bias
        self.wrz_bf16 = jnp.concatenate([w_ih_t[:, :h2], w_hh_t[:, :h2]],
                                        axis=0).astype(jnp.bfloat16)        # (2h, 2h)
        self.b_rz = (b_ih[:h2] + b_hh[:h2]).reshape(1, h2)
        # n gate keeps separate input/hidden paths (b_hn sits inside r*(...))
        self.win_bf16 = w_ih_t[:, h2:].astype(jnp.bfloat16)                 # (h, h)
        self.b_in = b_ih[h2:].reshape(1, h_dim)
        self.whn_bf16 = w_hh_t[:, h2:].astype(jnp.bfloat16)                 # (h, h)
        self.b_hn = b_hh[h2:].reshape(1, h_dim)

        # Defined in __init__ but unused by this forward branch (shape fidelity)
        self.time_gate_weight = xavier_uniform(ks[9], (h_dim, h_dim),
                                               gain=math.sqrt(2.0))
        self.time_gate_bias = jnp.zeros((h_dim,), jnp.float32)
        self.pre_gate_weight = xavier_uniform(ks[10], (h_dim, h_dim),
                                              gain=math.sqrt(2.0))

        self.query_mask = None

        # compile the per-timestep (scatter glue + fused kernel) once
        self._step = jax.jit(functools.partial(_recurrent_step, tile_m=tile_m))

    # ---- query encoder: gather/segment-mean form of (one_hot @ W^T + b).relu() ----
    def _query_encoder(self, que_pair):
        uniq_e, r_len, r_idx = que_pair
        uniq_e = np.asarray(uniq_e, np.int32)
        r_idx = np.asarray(r_idx, np.int32)
        if len(r_len) > 0:
            seg_ids = np.concatenate(
                [np.full(max(e - s, 0), i, np.int32) for i, (s, e) in enumerate(r_len)])
            counts = np.asarray([max(e - s, 0) for (s, e) in r_len], np.float32)
        else:
            seg_ids = np.zeros((0,), np.int32)
            counts = np.zeros((0,), np.float32)
        # e_input[e] @ W^T == mean over its rel_ids (with multiplicity) of q_w_t rows
        gathered = self.q_w_t[jnp.asarray(r_idx)]                       # (nnz, h)
        sums = jnp.zeros((len(uniq_e), self.h_dim), jnp.float32
                         ).at[jnp.asarray(seg_ids)].add(gathered)
        means = sums / jnp.maximum(jnp.asarray(counts)[:, None], 1.0)
        base = jnp.maximum(self.q_b, 0.0)                               # rows not in uniq_e
        qm = jnp.broadcast_to(base, (self.num_ents, self.h_dim))
        return qm.at[jnp.asarray(uniq_e)].set(jnp.maximum(means + self.q_b, 0.0))

    # ---- forward (pre_type == 'GRU', use_static=False, layer_norm=True) ------
    def forward(self, que_pair, g_list):
        # self.h = F.normalize(dynamic_emb)  (computed on the tile_m-padded array;
        # zero pad rows stay zero and never interact with real rows)
        h_pad0 = jnp.pad(self.dynamic_emb,
                         ((0, self.m_pad - self.num_ents), (0, 0)))
        h = l2_normalize(h_pad0, tile_m=self.tile_m)                    # Pallas

        his_r_emb, his_emb = [], []                                     # add_his_graph=False
        his_rel_embs = []

        # hr is loop-invariant (emb_rel does not change inside forward): hoisted
        hr = l2_normalize(self.emb_rel, tile_m=self.tile_m)             # Pallas

        # args.use_onehot path (query_mask computed by reference forward; unused
        # by the GRU-branch return value)
        self.query_mask = self._query_encoder(que_pair)

        history_embs = []
        for g in g_list:
            h = self._step(h, g["src"], g["dst"], g["etype"], self.emb_rel,
                           self.wn_bf16, self.wrz_bf16, self.b_rz,
                           self.win_bf16, self.b_in, self.whn_bf16, self.b_hn)
            history_embs.append(h[:self.num_ents])
            his_rel_embs.append(hr)

        history_emb = history_embs[-1]
        static_emb = None       # use_static=False
        static_remb = None
        return (history_emb, static_emb, static_remb, hr, his_emb, his_r_emb,
                his_rel_embs)


# ----------------------------------------------------------------------------
if __name__ == "__main__":
    num_ents, num_rels, h_dim = 300, 10, 128      # non-multiple of tile_m: tests padding
    n_steps, edges_per_graph = 3, 512

    root = jax.random.PRNGKey(0)
    k_model, k_graph = jax.random.split(root)
    model = RecurrentRGCNPallas(num_ents, num_rels, h_dim, k_model, tile_m=256)

    # synthetic temporal graphs (src, dst, edge-type), deterministic
    g_list = []
    gk = k_graph
    for _ in range(n_steps):
        gk, k1, k2, k3 = jax.random.split(gk, 4)
        g_list.append(dict(
            src=jax.random.randint(k1, (edges_per_graph,), 0, num_ents),
            dst=jax.random.randint(k2, (edges_per_graph,), 0, num_ents),
            etype=jax.random.randint(k3, (edges_per_graph,), 0, 2 * num_rels),
        ))

    # que_pair = (uniq_e, r_len, r_idx)
    uniq_e = np.array([0, 5, 17, 200], np.int32)
    r_len = [(0, 3), (3, 5), (5, 9), (9, 12)]
    r_idx = np.array([1, 4, 4, 0, 7, 3, 3, 9, 12, 15, 2, 2], np.int32)
    que_pair = (uniq_e, r_len, r_idx)

    outs = model.forward(que_pair, g_list)
    history_emb, _, _, hr, _, _, his_rel_embs = outs

    jax.block_until_ready(history_emb)
    jax.block_until_ready(hr)
    jax.block_until_ready(model.query_mask)
    assert history_emb.shape == (num_ents, h_dim)
    assert hr.shape == (2 * num_rels, h_dim)
    assert model.query_mask.shape == (num_ents, h_dim)
    assert len(his_rel_embs) == n_steps
    assert bool(jnp.all(jnp.isfinite(history_emb)))
    print("KERNEL_OK")
</pallas_src>

<mosaic_0001>
module attributes {stable_mosaic.version = 11 : i64} {
  func.func @_l2norm_kernel(%arg0: i32, %arg1: memref<256x128xf32, #tpu.memory_space<vmem>>, %arg2: memref<256x128xf32, #tpu.memory_space<vmem>>) attributes {dimension_semantics = [#tpu.dimension_semantics<parallel>], iteration_bounds = array<i64: 2>, scalar_prefetch = 0 : i64, scratch_operands = 0 : i64, tpu.core_type = #tpu.core_type<tc>, window_params = [{transform_indices = @transform_0, window_bounds = array<i64: 256, 128>}, {transform_indices = @transform_1, window_bounds = array<i64: 256, 128>}]} {
    %c0 = arith.constant 0 : index
    %c0_0 = arith.constant 0 : index
    %0 = vector.load %arg1[%c0, %c0_0] : memref<256x128xf32, #tpu.memory_space<vmem>>, vector<256x128xf32>
    %1 = arith.mulf %0, %0 : vector<256x128xf32>
    %cst = arith.constant dense<0.000000e+00> : vector<256xf32>
    %2 = vector.multi_reduction <add>, %1, %cst [1] : vector<256x128xf32> to vector<256xf32>
    %3 = vector.shape_cast %2 : vector<256xf32> to vector<256x1xf32>
    %cst_1 = arith.constant 1.000000e-24 : f32
    %4 = vector.broadcast %cst_1 : f32 to vector<256x1xf32>
    %5 = arith.maximumf %3, %4 : vector<256x1xf32>
    %6 = math.rsqrt %5 : vector<256x1xf32>
    %7 = vector.broadcast %6 : vector<256x1xf32> to vector<256x128xf32>
    %8 = arith.mulf %0, %7 : vector<256x128xf32>
    %c0_2 = arith.constant 0 : index
    %c0_3 = arith.constant 0 : index
    %9 = vector.load %arg2[%c0_2, %c0_3] : memref<256x128xf32, #tpu.memory_space<vmem>>, vector<256x128xf32>
    tpu.vector_store %arg2[%c0_2, %c0_3], %8 {strides = array<i32>} : memref<256x128xf32, #tpu.memory_space<vmem>>, vector<256x128xf32>,
    return
  }
  func.func @transform_0(%arg0: i32) -> (i32, i32) {
    %c0_i32 = arith.constant 0 : i32
    %c0_i32_0 = arith.constant 0 : i32
    return %arg0, %c0_i32 : i32, i32
  }
  func.func @transform_1(%arg0: i32) -> (i32, i32) {
    %c0_i32 = arith.constant 0 : i32
    %c0_i32_0 = arith.constant 0 : i32
    return %arg0, %c0_i32 : i32, i32
  }
}

</mosaic_0001>

<bundles_post_ra>
// kernel: tpu_custom_call.1
= control target key start
LH: loop header
LB: loop body
LE: loop exit
PB: predicated region body
PF: predicated region fallthrough
CT: control target
= control target key end

     0   :  { %6 = vsyncpa [#allocation3], 0  ;;  %s1107_s0 = inlined_call_operand.hbm [shape: f32[512,128], index: 0, kind: input, shape index: {}]   ;;  %s1108_s1 = inlined_call_operand.hbm [shape: f32[512,128], index: 1, kind: output, shape index: {}]  }
   0x1   :  { %8 = vsyncpa [#allocation3 + $0x1], 0 }
   0x2   :  { %9 = vsyncpa [#allocation4], 0 }
   0x3   :  { %11 = vsyncpa [#allocation4 + $0x1], 0  ;;  %s720_s6 = smov 0   ;;  %s722_s7 = smov 0  }
   0x4   :  { %s724_s8 = smov 0   ;;  %s726_s9 = smov 0  }
   0x5 LB: > { %s741_s10 = sadd.s32 4294967295, %s702_s9   ;;  %s480_s11 = sadd.s32 4294967294, %s702_s9   ;;  %s702_s9 = sphi %s726_s9, %s1123_s9   ;;  %s698_s8 = sphi %s724_s8, %s1122_s8   ;;  %s694_s7 = sphi %s722_s7, %s1121_s7   ;;  %s690_s6 = sphi %s720_s6, %s1120_s6  }
   0x6   : > { %s745_s12 = sadd.s32 1, %s702_s9   ;;  %s24_s13 = sadd.s32 1, %s698_s8 }
   0x7   : > { %s21_s14 = ssub.s32 %s702_s9, %s745_s12  ;;  %p31_p0 = scmp.ne.s32.totalorder %s698_s8, %s694_s7 }
   0x8   : > { %p22_p1 = scmp.eq.s32.totalorder %s21_s14, 0  ;;  %p32_p2 = scmp.eq.s32.totalorder %s702_s9, 0 }
   0x9   : > { %p37_p3 = scmp.ne.s32.totalorder %s694_s7, %s690_s6  ;;  %p38_p4 = scmp.eq.s32.totalorder %s741_s10, 0 }
   0xa   : > { %s757_s15 = scalar_select %p22_p1, %s698_s8, %s24_s13  }
   0xb   : > { %p759_p5 = por %p32_p2, %p31_p0  ;;  %p763_p6 = por %p38_p4, %p37_p3 }
   0xc   : > { %p61_p7 = scmp.eq.s32.totalorder %s741_s10, 1  ;;  %p67_p8 = scmp.eq.s32.totalorder %s480_s11, 1 }
   0xd   : > { %s1112_s17 = scalar_select %p763_p6, 1, 0 }
   0xe   : > { %p508_p10 = scmp.lt.s32.totalorder %s702_s9, 2  ;;  %p770_p11 = por %p61_p7, %p31_p0 }
   0xf   : > { %p774_p12 = por %p67_p8, %p37_p3  ;;  %s87_s20 = sand.u32 1, %s698_s8  }
  0x10   : > { %s1113_s18 = scalar_select %p770_p11, 1, 0 }
  0x11   : > { %s1114_s19 = scalar_select %p774_p12, 1, 0 }
  0x12   : > { %s494_s21 = sshll.u32 %s702_s9, 12  ;;  %s483_s22 = sshll.u32 %s87_s20, 8 }
  0x13   : > { %s783_s25 = scalar_lea.hbm %s1107_s0, %s494_s21  ;;  %s91_s26 = scalar_lea.vmem [#allocation2], %s483_s22 }
  0x14   : > { %s98_s27 = sshll.u32 %s91_s26, 4  ;;  %p787_p13 = pnand %p508_p10, %p759_p5  ;;  %s791_s27 = int_to_ptr.vmem [resolvable:$true] %s98_s27 }
  0x15   : > { %s793_s29 = scalar_lea.sflag [#allocation3], %s87_s20  ;;  %s610_s30 = scalar_lea.hbm %s783_s25, 4096 }
  0x16   : > { %p611_p0 = scmp.ne.s32.totalorder %s783_s25, %s610_s30  ;;  %p612_p1 = pneg %p787_p13 }
  0x17   : > { %s615_s4 = scalar_lea.hbm %s1107_s0, 8192  ;;  %p616_p4 = scmp.lt.s32.totalorder %s783_s25, %s1107_s0 }
  0x18   : > { %p613_p2 = pnand %p612_p1, %p611_p0  ;;  %p617_p5 = scmp.lt.s32.totalorder %s615_s4, %s610_s30 }
  0x1a   : > { %p614_p3 = pneg %p613_p2  ;;  %p618_p7 = por %p617_p5, %p616_p4 }
  0x1c   : > { %p619_p8 = pnand %p618_p7, %p614_p3 }
  0x1e   : > { %622 = shalt.err (!%p619_p8)
}
  0x1f   : > { %s623_s13 = scalar_lea.vmem %s791_s27, 4096  ;;  %s704_s14 = smov [#allocation2]  }
  0x20   : > { %p624_p10 = scmp.ne.s32.totalorder %s791_s27, %s623_s13  ;;  %s628_s16 = sshll.u32 %s704_s14, 4  ;;  %s629_s16 = int_to_ptr.vmem [resolvable:$false] %s628_s16 }
  0x21   : > { %s630_s20 = scalar_lea.vmem %s629_s16, 8192  ;;  %p631_p2 = scmp.lt.s32.totalorder %s791_s27, %s629_s16 }
  0x22   : > { %p626_p9 = pnand %p624_p10, %p612_p1  ;;  %p632_p12 = scmp.lt.s32.totalorder %s630_s20, %s623_s13 }
  0x24   : > { %p627_p0 = pneg %p626_p9  ;;  %p633_p11 = por %p632_p12, %p631_p2 }
  0x26   : > { %p634_p6 = pnand %p633_p11, %p627_p0 }
  0x28   : > { %637 = shalt.err (!%p634_p6)
}
  0x29   : > { %s705_s21 = smov 128   ;;  %s706_s22 = smov 8  }
  0x2a   : > { %503 = dma.hbm_to_vmem [thread:$0]  (!%p787_p13), %s783_s25, 4096, %s791_s27, %s793_s29, %s705_s21, %s705_s21, %s706_s22  }
  0x2b   : > { %p486_p9 = scmp.ge.s32.totalorder %s702_s9, 1  ;;  %p106_p1 = scmp.lt.s32.totalorder %s702_s9, 3 }
  0x2d   : > { %p107_p3 = pnand %p486_p9, %p106_p1 }
  0x2e   : > { %s817_s23 = sand.u32 (!%p107_p3), 1, %s694_s7   ;;  %p1116_p6 = scmp.ne.s32.totalorder (!%p107_p3), %s1112_s17, 0 }
  0x2f   : > { %110 = sbr.rel (%p107_p3) target bundleno = 287 (0x11f), region = 24  ;;  %s487_s24 = sshll.u32 (!%p107_p3), %s817_s23, 8 }
  0x30   : > { %s113_s26 = scalar_lea.sflag (!%p107_p3), [#allocation3], %s817_s23  ;;  %s823_s30 = scalar_lea.vmem (!%p107_p3), [#allocation2], %s487_s24 }
  0x34   : > { %681 = dma.done.wait (%p1116_p6), %s113_s26, 4096  }
  0x35   : > { %683 = vsyncadd (%p1116_p6), %s113_s26, 4294963200  ;;  %v830_v0 = vld [vmem:[%s823_s30 + $0x10] sm:$0xff]  ;;  %v833_v1 = vld [vmem:[%s823_s30] sm:$0xff]  ;;  %s993_s17 = scalar_lea.vmem [#allocation5], %s487_s24  ;;  %s495_s25 = sshll.u32 %s741_s10, 12 }
  0x36   : > { %v836_v2 = vld [vmem:[%s823_s30 + $0x18] sm:$0xff]  ;;  %v171_v3 = vmul.f32 %v830_v0, %v830_v0  ;;  %v169_v4 = vmul.f32 %v833_v1, %v833_v1  ;;  %v843_v5 = vld [vmem:[%s823_s30 + $0x8] sm:$0xff]  ;;  %v853_v9 = vld [vmem:[%s823_s30 + $0x20] sm:$0xff]  ;;  %s407_s27 = sshll.u32 %s993_s17, 4  ;;  %s1059_s2 = scalar_lea.hbm %s1108_s1, %s495_s25  ;;  %s1061_s27 = int_to_ptr.vmem [resolvable:$true] %s407_s27 }
  0x37   : > { %v172_v6 = vmul.f32 %v836_v2, %v836_v2  ;;  %v170_v7 = vmul.f32 %v843_v5, %v843_v5  ;;  %v850_v8 = vld [vmem:[%s823_s30 + $0x28] sm:$0xff]  ;;  %v173_v11 = vmul.f32 %v853_v9, %v853_v9  ;;  %v860_v12 = vld [vmem:[%s823_s30 + $0x38] sm:$0xff]  ;;  %v863_v13 = vld [vmem:[%s823_s30 + $0x30] sm:$0xff]  ;;  %s394_s10 = scalar_lea.sflag [#allocation4], %s817_s23  ;;  %s638_s3 = scalar_lea.vmem %s1061_s27, 4096 }
  0x38   : > { %205 = vadd.xlane.f32.xlu1 %v171_v3  ;;  %201 = vadd.xlane.f32.xlu0 %v169_v4  ;;  %v174_v10 = vmul.f32 %v850_v8, %v850_v8  ;;  %v176_v14 = vmul.f32 %v860_v12, %v860_v12  ;;  %v175_v15 = vmul.f32 %v863_v13, %v863_v13  ;;  %v870_v16 = vld [vmem:[%s823_s30 + $0x48] sm:$0xff]  ;;  %v873_v17 = vld [vmem:[%s823_s30 + $0x40] sm:$0xff]  ;;  %v880_v20 = vld [vmem:[%s823_s30 + $0x58] sm:$0xff]  ;;  %p639_p11 = scmp.ne.s32.totalorder %s1061_s27, %s638_s3  ;;  %p1117_p12 = scmp.ne.s32.totalorder %s1113_s18, 0 }
  0x39   : > { %v178_v18 = vmul.f32 %v870_v16, %v870_v16  ;;  %v177_v19 = vmul.f32 %v873_v17, %v873_v17  ;;  %v883_v21 = vld [vmem:[%s823_s30 + $0x50] sm:$0xff]  ;;  %v180_v22 = vmul.f32 %v880_v20, %v880_v20  ;;  %v890_v24 = vld [vmem:[%s823_s30 + $0x68] sm:$0xff]  ;;  %v893_v25 = vld [vmem:[%s823_s30 + $0x60] sm:$0xff]  ;;  %s707_s4 = smov [#allocation5]  }
  0x3a   : > { %v179_v23 = vmul.f32 %v883_v21, %v883_v21  ;;  %v182_v26 = vmul.f32 %v890_v24, %v890_v24  ;;  %v181_v27 = vmul.f32 %v893_v25, %v893_v25  ;;  %v900_v28 = vld [vmem:[%s823_s30 + $0x78] sm:$0xff]  ;;  %v903_v29 = vld [vmem:[%s823_s30 + $0x70] sm:$0xff]  ;;  %v910_v32 = vld [vmem:[%s823_s30 + $0x88] sm:$0xff]  ;;  %p640_p13 = pnand %p639_p11, %p1117_p12  ;;  %s642_s5 = sshll.u32 %s707_s4, 4  ;;  %s643_s5 = int_to_ptr.vmem [resolvable:$false] %s642_s5 }
  0x3b   : > { %v184_v30 = vmul.f32 %v900_v28, %v900_v28  ;;  %v183_v31 = vmul.f32 %v903_v29, %v903_v29  ;;  %v913_v33 = vld [vmem:[%s823_s30 + $0x80] sm:$0xff]  ;;  %v186_v34 = vmul.f32 %v910_v32, %v910_v32  ;;  %v920_v36 = vld [vmem:[%s823_s30 + $0x98] sm:$0xff]  ;;  %v923_v37 = vld [vmem:[%s823_s30 + $0x90] sm:$0xff]  ;;  %s644_s11 = scalar_lea.vmem %s643_s5, 8192  ;;  %p645_p5 = scmp.lt.s32.totalorder %s1061_s27, %s643_s5 }
  0x3c   : > { %207 = vadd.xlane.f32.xlu1 %v172_v6  ;;  %203 = vadd.xlane.f32.xlu0 %v170_v7  ;;  %v185_v35 = vmul.f32 %v913_v33, %v913_v33  ;;  %v188_v38 = vmul.f32 %v920_v36, %v920_v36  ;;  %v187_v39 = vmul.f32 %v923_v37, %v923_v37  ;;  %v930_v40 = vld [vmem:[%s823_s30 + $0xa8] sm:$0xff]  ;;  %v933_v41 = vld [vmem:[%s823_s30 + $0xa0] sm:$0xff]  ;;  %v940_v44 = vld [vmem:[%s823_s30 + $0xb8] sm:$0xff]  ;;  %p641_p4 = pneg %p640_p13  ;;  %p646_p7 = scmp.lt.s32.totalorder %s644_s11, %s638_s3 }
  0x3d   : > { %v190_v42 = vmul.f32 %v930_v40, %v930_v40  ;;  %v189_v43 = vmul.f32 %v933_v41, %v933_v41  ;;  %v943_v45 = vld [vmem:[%s823_s30 + $0xb0] sm:$0xff]  ;;  %v192_v46 = vmul.f32 %v940_v44, %v940_v44  ;;  %v950_v48 = vld [vmem:[%s823_s30 + $0xc8] sm:$0xff]  ;;  %v953_v49 = vld [vmem:[%s823_s30 + $0xc0] sm:$0xff] }
  0x3e   : > { %v191_v47 = vmul.f32 %v943_v45, %v943_v45  ;;  %v194_v50 = vmul.f32 %v950_v48, %v950_v48  ;;  %v193_v51 = vmul.f32 %v953_v49, %v953_v49  ;;  %v960_v52 = vld [vmem:[%s823_s30 + $0xd8] sm:$0xff]  ;;  %v963_v53 = vld [vmem:[%s823_s30 + $0xd0] sm:$0xff]  ;;  %v970_v56 = vld [vmem:[%s823_s30 + $0xe8] sm:$0xff]  ;;  %p647_p8 = por %p646_p7, %p645_p5 }
  0x3f   : > { %v196_v54 = vmul.f32 %v960_v52, %v960_v52  ;;  %v195_v55 = vmul.f32 %v963_v53, %v963_v53  ;;  %v973_v57 = vld [vmem:[%s823_s30 + $0xe0] sm:$0xff]  ;;  %v198_v58 = vmul.f32 %v970_v56, %v970_v56  ;;  %v980_v60 = vld [vmem:[%s823_s30 + $0xf8] sm:$0xff]  ;;  %v983_v61 = vld [vmem:[%s823_s30 + $0xf0] sm:$0xff] }
  0x40   : > { %211 = vadd.xlane.f32.xlu1 %v174_v10  ;;  %209 = vadd.xlane.f32.xlu0 %v173_v11  ;;  %v197_v59 = vmul.f32 %v973_v57, %v973_v57  ;;  %v200_v62 = vmul.f32 %v980_v60, %v980_v60  ;;  %v199_v63 = vmul.f32 %v983_v61, %v983_v61  ;;  %p648_p10 = pnand %p647_p8, %p641_p4 }
  0x44   : > { %215 = vadd.xlane.f32.xlu1 %v176_v14  ;;  %213 = vadd.xlane.f32.xlu0 %v175_v15 }
  0x48   : > { %219 = vadd.xlane.f32.xlu1 %v178_v18  ;;  %217 = vadd.xlane.f32.xlu0 %v177_v19 }
  0x4c   : > { %223 = vadd.xlane.f32.xlu1 %v180_v22  ;;  %221 = vadd.xlane.f32.xlu0 %v179_v23 }
  0x50   : > { %227 = vadd.xlane.f32.xlu1 %v182_v26  ;;  %225 = vadd.xlane.f32.xlu0 %v181_v27 }
  0x54   : > { %231 = vadd.xlane.f32.xlu1 %v184_v30  ;;  %229 = vadd.xlane.f32.xlu0 %v183_v31 }
  0x58   : > { %235 = vadd.xlane.f32.xlu1 %v186_v34  ;;  %233 = vadd.xlane.f32.xlu0 %v185_v35 }
  0x5c   : > { %239 = vadd.xlane.f32.xlu1 %v188_v38  ;;  %237 = vadd.xlane.f32.xlu0 %v187_v39 }
  0x60   : > { %243 = vadd.xlane.f32.xlu1 %v190_v42  ;;  %241 = vadd.xlane.f32.xlu0 %v189_v43 }
  0x64   : > { %247 = vadd.xlane.f32.xlu1 %v192_v46  ;;  %245 = vadd.xlane.f32.xlu0 %v191_v47 }
  0x68   : > { %251 = vadd.xlane.f32.xlu1 %v194_v50  ;;  %249 = vadd.xlane.f32.xlu0 %v193_v51 }
  0x6c   : > { %255 = vadd.xlane.f32.xlu1 %v196_v54  ;;  %253 = vadd.xlane.f32.xlu0 %v195_v55 }
  0x70   : > { %259 = vadd.xlane.f32.xlu1 %v198_v58  ;;  %257 = vadd.xlane.f32.xlu0 %v197_v59 }
  0x74   : > { %263 = vadd.xlane.f32.xlu1 %v200_v62  ;;  %261 = vadd.xlane.f32.xlu0 %v199_v63 }
  0xc1   : > { %v206_v3 = vpop.xlane.xlu1 %205  ;;  %v202_v4 = vpop.xlane.xlu0 %201 }
  0xc2   : > { %v267_v6 = vmax.f32 %v206_v3, 1e-24  ;;  %v265_v7 = vmax.f32 %v202_v4, 1e-24 }
  0xc4   : > { %546 = vrsqrt.f32 %v267_v6 }
  0xc5   : > { %548 = vrsqrt.f32 %v265_v7  ;;  %v208_v10 = vpop.xlane.xlu1 %207  ;;  %v204_v11 = vpop.xlane.xlu0 %203 }
  0xc6   : > { %v268_v14 = vmax.f32 %v208_v10, 1e-24  ;;  %v266_v15 = vmax.f32 %v204_v11, 1e-24 }
  0xc8   : > { %550 = vrsqrt.f32 %v268_v14 }
  0xc9   : > { %552 = vrsqrt.f32 %v266_v15  ;;  %v212_v18 = vpop.xlane.xlu1 %211  ;;  %v210_v19 = vpop.xlane.xlu0 %209 }
  0xca   : > { %v270_v22 = vmax.f32 %v212_v18, 1e-24  ;;  %v269_v23 = vmax.f32 %v210_v19, 1e-24 }
  0xcc   : > { %554 = vrsqrt.f32 %v270_v22 }
  0xcd   : > { %556 = vrsqrt.f32 %v269_v23  ;;  %v216_v26 = vpop.xlane.xlu1 %215  ;;  %v214_v27 = vpop.xlane.xlu0 %213 }
  0xce   : > { %v272_v30 = vmax.f32 %v216_v26, 1e-24  ;;  %v271_v31 = vmax.f32 %v214_v27, 1e-24 }
  0xd0   : > { %558 = vrsqrt.f32 %v272_v30 }
  0xd1   : > { %v547_v34 = vpop.eup %546  ;;  %560 = vrsqrt.f32 %v271_v31  ;;  %v220_v35 = vpop.xlane.xlu1 %219 }
  0xd2   : > { %v218_v38 = vpop.xlane.xlu0 %217  ;;  %v549_v39 = vpop.eup %548  ;;  %v331_v42 = vmul.f32 %v547_v34, %v830_v0  ;;  %v274_v43 = vmax.f32 %v220_v35, 1e-24 }
  0xd3   : > { %v273_v46 = vmax.f32 %v218_v38, 1e-24  ;;  %v329_v47 = vmul.f32 %v549_v39, %v833_v1 }
  0xd4   : > { %363 = vst [vmem:[%s993_s17 + $0x10] sm:$0xff] %v331_v42  ;;  %562 = vrsqrt.f32 %v274_v43 }
  0xd5   : > { %v551_v50 = vpop.eup %550  ;;  %361 = vst [vmem:[%s993_s17] sm:$0xff] %v329_v47  ;;  %564 = vrsqrt.f32 %v273_v46  ;;  %v224_v51 = vpop.xlane.xlu1 %223 }
  0xd6   : > { %v222_v54 = vpop.xlane.xlu0 %221  ;;  %v553_v55 = vpop.eup %552  ;;  %v332_v0 = vmul.f32 %v551_v50, %v836_v2  ;;  %v276_v58 = vmax.f32 %v224_v51, 1e-24 }
  0xd7   : > { %v275_v1 = vmax.f32 %v222_v54, 1e-24  ;;  %v330_v59 = vmul.f32 %v553_v55, %v843_v5 }
  0xd8   : > { %364 = vst [vmem:[%s993_s17 + $0x18] sm:$0xff] %v332_v0  ;;  %566 = vrsqrt.f32 %v276_v58 }
  0xd9   : > { %v555_v62 = vpop.eup %554  ;;  %362 = vst [vmem:[%s993_s17 + $0x8] sm:$0xff] %v330_v59  ;;  %568 = vrsqrt.f32 %v275_v1  ;;  %v228_v63 = vpop.xlane.xlu1 %227 }
  0xda   : > { %v226_v3 = vpop.xlane.xlu0 %225  ;;  %v557_v4 = vpop.eup %556  ;;  %v334_v6 = vmul.f32 %v555_v62, %v850_v8  ;;  %v278_v7 = vmax.f32 %v228_v63, 1e-24 }
  0xdb   : > { %v277_v10 = vmax.f32 %v226_v3, 1e-24  ;;  %v333_v2 = vmul.f32 %v557_v4, %v853_v9 }
  0xdc   : > { %366 = vst [vmem:[%s993_s17 + $0x28] sm:$0xff] %v334_v6  ;;  %570 = vrsqrt.f32 %v278_v7 }
  0xdd   : > { %v559_v5 = vpop.eup %558  ;;  %365 = vst [vmem:[%s993_s17 + $0x20] sm:$0xff] %v333_v2  ;;  %572 = vrsqrt.f32 %v277_v10  ;;  %v232_v11 = vpop.xlane.xlu1 %231 }
  0xde   : > { %v230_v14 = vpop.xlane.xlu0 %229  ;;  %v561_v15 = vpop.eup %560  ;;  %v336_v18 = vmul.f32 %v559_v5, %v860_v12  ;;  %v280_v19 = vmax.f32 %v232_v11, 1e-24 }
  0xdf   : > { %v279_v22 = vmax.f32 %v230_v14, 1e-24  ;;  %v335_v8 = vmul.f32 %v561_v15, %v863_v13 }
  0xe0   : > { %368 = vst [vmem:[%s993_s17 + $0x38] sm:$0xff] %v336_v18  ;;  %574 = vrsqrt.f32 %v280_v19 }
  0xe1   : > { %v563_v9 = vpop.eup %562  ;;  %367 = vst [vmem:[%s993_s17 + $0x30] sm:$0xff] %v335_v8  ;;  %576 = vrsqrt.f32 %v279_v22  ;;  %v236_v23 = vpop.xlane.xlu1 %235 }
  0xe2   : > { %v234_v26 = vpop.xlane.xlu0 %233  ;;  %v565_v27 = vpop.eup %564  ;;  %v338_v30 = vmul.f32 %v563_v9, %v870_v16  ;;  %v282_v31 = vmax.f32 %v236_v23, 1e-24 }
  0xe3   : > { %v281_v34 = vmax.f32 %v234_v26, 1e-24  ;;  %v337_v12 = vmul.f32 %v565_v27, %v873_v17 }
  0xe4   : > { %370 = vst [vmem:[%s993_s17 + $0x48] sm:$0xff] %v338_v30  ;;  %578 = vrsqrt.f32 %v282_v31 }
  0xe5   : > { %v567_v13 = vpop.eup %566  ;;  %369 = vst [vmem:[%s993_s17 + $0x40] sm:$0xff] %v337_v12  ;;  %580 = vrsqrt.f32 %v281_v34  ;;  %v240_v35 = vpop.xlane.xlu1 %239 }
  0xe6   : > { %v238_v38 = vpop.xlane.xlu0 %237  ;;  %v569_v39 = vpop.eup %568  ;;  %v340_v42 = vmul.f32 %v567_v13, %v880_v20  ;;  %v284_v43 = vmax.f32 %v240_v35, 1e-24 }
  0xe7   : > { %v283_v46 = vmax.f32 %v238_v38, 1e-24  ;;  %v339_v16 = vmul.f32 %v569_v39, %v883_v21 }
  0xe8   : > { %372 = vst [vmem:[%s993_s17 + $0x58] sm:$0xff] %v340_v42  ;;  %582 = vrsqrt.f32 %v284_v43 }
  0xe9   : > { %v571_v17 = vpop.eup %570  ;;  %371 = vst [vmem:[%s993_s17 + $0x50] sm:$0xff] %v339_v16  ;;  %584 = vrsqrt.f32 %v283_v46  ;;  %v244_v47 = vpop.xlane.xlu1 %243 }
  0xea   : > { %v242_v50 = vpop.xlane.xlu0 %241  ;;  %v573_v51 = vpop.eup %572  ;;  %v342_v54 = vmul.f32 %v571_v17, %v890_v24  ;;  %v286_v55 = vmax.f32 %v244_v47, 1e-24 }
  0xeb   : > { %v285_v0 = vmax.f32 %v242_v50, 1e-24  ;;  %v341_v20 = vmul.f32 %v573_v51, %v893_v25 }
  0xec   : > { %374 = vst [vmem:[%s993_s17 + $0x68] sm:$0xff] %v342_v54  ;;  %586 = vrsqrt.f32 %v286_v55 }
  0xed   : > { %v575_v21 = vpop.eup %574  ;;  %373 = vst [vmem:[%s993_s17 + $0x60] sm:$0xff] %v341_v20  ;;  %588 = vrsqrt.f32 %v285_v0  ;;  %v248_v58 = vpop.xlane.xlu1 %247 }
  0xee   : > { %v246_v1 = vpop.xlane.xlu0 %245  ;;  %v577_v59 = vpop.eup %576  ;;  %v344_v62 = vmul.f32 %v575_v21, %v900_v28  ;;  %v288_v63 = vmax.f32 %v248_v58, 1e-24 }
  0xef   : > { %v287_v3 = vmax.f32 %v246_v1, 1e-24  ;;  %v343_v24 = vmul.f32 %v577_v59, %v903_v29 }
  0xf0   : > { %376 = vst [vmem:[%s993_s17 + $0x78] sm:$0xff] %v344_v62  ;;  %590 = vrsqrt.f32 %v288_v63 }
  0xf1   : > { %v579_v25 = vpop.eup %578  ;;  %375 = vst [vmem:[%s993_s17 + $0x70] sm:$0xff] %v343_v24  ;;  %592 = vrsqrt.f32 %v287_v3  ;;  %v252_v4 = vpop.xlane.xlu1 %251 }
  0xf2   : > { %v250_v6 = vpop.xlane.xlu0 %249  ;;  %v581_v7 = vpop.eup %580  ;;  %v346_v10 = vmul.f32 %v579_v25, %v910_v32  ;;  %v290_v2 = vmax.f32 %v252_v4, 1e-24 }
  0xf3   : > { %v289_v5 = vmax.f32 %v250_v6, 1e-24  ;;  %v345_v28 = vmul.f32 %v581_v7, %v913_v33 }
  0xf4   : > { %378 = vst [vmem:[%s993_s17 + $0x88] sm:$0xff] %v346_v10  ;;  %594 = vrsqrt.f32 %v290_v2 }
  0xf5   : > { %v583_v29 = vpop.eup %582  ;;  %377 = vst [vmem:[%s993_s17 + $0x80] sm:$0xff] %v345_v28  ;;  %596 = vrsqrt.f32 %v289_v5  ;;  %v256_v11 = vpop.xlane.xlu1 %255 }
  0xf6   : > { %v254_v14 = vpop.xlane.xlu0 %253  ;;  %v585_v15 = vpop.eup %584  ;;  %v348_v18 = vmul.f32 %v583_v29, %v920_v36  ;;  %v292_v19 = vmax.f32 %v256_v11, 1e-24 }
  0xf7   : > { %v291_v22 = vmax.f32 %v254_v14, 1e-24  ;;  %v347_v32 = vmul.f32 %v585_v15, %v923_v37 }
  0xf8   : > { %380 = vst [vmem:[%s993_s17 + $0x98] sm:$0xff] %v348_v18  ;;  %598 = vrsqrt.f32 %v292_v19 }
  0xf9   : > { %v587_v33 = vpop.eup %586  ;;  %379 = vst [vmem:[%s993_s17 + $0x90] sm:$0xff] %v347_v32  ;;  %600 = vrsqrt.f32 %v291_v22  ;;  %v260_v8 = vpop.xlane.xlu1 %259 }
  0xfa   : > { %v258_v9 = vpop.xlane.xlu0 %257  ;;  %v589_v23 = vpop.eup %588  ;;  %v350_v26 = vmul.f32 %v587_v33, %v930_v40  ;;  %v294_v27 = vmax.f32 %v260_v8, 1e-24 }
  0xfb   : > { %v293_v30 = vmax.f32 %v258_v9, 1e-24  ;;  %v349_v36 = vmul.f32 %v589_v23, %v933_v41 }
  0xfc   : > { %382 = vst [vmem:[%s993_s17 + $0xa8] sm:$0xff] %v350_v26  ;;  %602 = vrsqrt.f32 %v294_v27 }
  0xfd   : > { %v591_v37 = vpop.eup %590  ;;  %381 = vst [vmem:[%s993_s17 + $0xa0] sm:$0xff] %v349_v36  ;;  %604 = vrsqrt.f32 %v293_v30  ;;  %v264_v31 = vpop.xlane.xlu1 %263 }
  0xfe   : > { %v262_v34 = vpop.xlane.xlu0 %261  ;;  %v593_v12 = vpop.eup %592  ;;  %v352_v13 = vmul.f32 %v591_v37, %v940_v44  ;;  %v296_v35 = vmax.f32 %v264_v31, 1e-24 }
  0xff   : > { %v295_v40 = vmax.f32 %v262_v34, 1e-24  ;;  %v351_v38 = vmul.f32 %v593_v12, %v943_v45 }
 0x100   : > { %384 = vst [vmem:[%s993_s17 + $0xb8] sm:$0xff] %v352_v13  ;;  %606 = vrsqrt.f32 %v296_v35 }
 0x101   : > { %v595_v41 = vpop.eup %594  ;;  %383 = vst [vmem:[%s993_s17 + $0xb0] sm:$0xff] %v351_v38  ;;  %608 = vrsqrt.f32 %v295_v40 }
 0x102   : > { %v597_v39 = vpop.eup %596  ;;  %v354_v42 = vmul.f32 %v595_v41, %v950_v48 }
 0x103   : > { %v353_v43 = vmul.f32 %v597_v39, %v953_v49 }
 0x104   : > { %386 = vst [vmem:[%s993_s17 + $0xc8] sm:$0xff] %v354_v42 }
 0x105   : > { %v599_v44 = vpop.eup %598  ;;  %385 = vst [vmem:[%s993_s17 + $0xc0] sm:$0xff] %v353_v43 }
 0x106   : > { %v601_v46 = vpop.eup %600  ;;  %v356_v45 = vmul.f32 %v599_v44, %v960_v52 }
 0x107   : > { %v355_v16 = vmul.f32 %v601_v46, %v963_v53 }
 0x108   : > { %388 = vst [vmem:[%s993_s17 + $0xd8] sm:$0xff] %v356_v45 }
 0x109   : > { %v603_v17 = vpop.eup %602  ;;  %387 = vst [vmem:[%s993_s17 + $0xd0] sm:$0xff] %v355_v16 }
 0x10a   : > { %v605_v47 = vpop.eup %604  ;;  %v358_v48 = vmul.f32 %v603_v17, %v970_v56 }
 0x10b   : > { %v357_v49 = vmul.f32 %v605_v47, %v973_v57 }
 0x10c   : > { %390 = vst [vmem:[%s993_s17 + $0xe8] sm:$0xff] %v358_v48 }
 0x10d   : > { %v607_v50 = vpop.eup %606  ;;  %389 = vst [vmem:[%s993_s17 + $0xe0] sm:$0xff] %v357_v49 }
 0x10e   : > { %v609_v52 = vpop.eup %608  ;;  %v360_v53 = vmul.f32 %v607_v50, %v980_v60 }
 0x10f   : > { %v359_v56 = vmul.f32 %v609_v52, %v983_v61 }
 0x110   : > { %392 = vst [vmem:[%s993_s17 + $0xf8] sm:$0xff] %v360_v53 }
 0x111   : > { %391 = vst [vmem:[%s993_s17 + $0xf0] sm:$0xff] %v359_v56 }
 0x112   : > { %651 = shalt.err (!%p648_p10)
}
 0x113   : > { %s652_s13 = scalar_lea.hbm %s1059_s2, 4096  ;;  %s656_s20 = scalar_lea.hbm %s1108_s1, 8192 }
 0x114   : > { %p653_p0 = scmp.ne.s32.totalorder %s1059_s2, %s652_s13  ;;  %p657_p1 = scmp.lt.s32.totalorder %s1059_s2, %s1108_s1 }
 0x115   : > { %p658_p3 = scmp.lt.s32.totalorder %s656_s20, %s652_s13 }
 0x116   : > { %p654_p2 = pnand %p653_p0, %p1117_p12 }
 0x117   : > { %p659_p6 = por %p658_p3, %p657_p1 }
 0x118   : > { %p655_p9 = pneg %p654_p2 }
 0x11a   : > { %p660_p11 = pnand %p659_p6, %p655_p9 }
 0x11c   : > { %663 = shalt.err (!%p660_p11)
}
 0x11d   : > { %s708_s24 = smov 128   ;;  %s709_s26 = smov 8  }
 0x11e   : > { %498 = dma.vmem_to_hbm [thread:$0]  (%p1117_p12), %s1061_s27, 4096, %s1059_s2, %s394_s10, %s708_s24, %s708_s24, %s709_s26  }
 0x11f PF: > { %s422_s30 = sand.u32 1, %s690_s6   ;;  %p1118_p13 = scmp.ne.s32.totalorder %s1114_s19, 0 }
 0x120   : > { %p1119_p4 = scmp.ge.s32.totalorder %s702_s9, 2  ;;  %s423_s17 = scalar_lea.sflag [#allocation4], %s422_s30 }
 0x122   : > { %p505_p5 = pnand %p1119_p4, %p1118_p13 }
 0x124   : > { %p506_p7 = pneg %p505_p5 }
 0x126   : > { %685 = dma.done.wait (%p506_p7), %s423_s17, 4096  }
 0x127   : > { %687 = vsyncadd (%p506_p7), %s423_s17, 4294963200  ;;  %p14_p8 = scmp.ge.s32.totalorder %s745_s12, 4   ;;  %s1120_s6 = smov %s694_s7 }
 0x128   : > { %s1121_s7 = smov %s698_s8  ;;  %s1122_s8 = smov %s757_s15 }
 0x129   : > { %s1123_s9 = smov %s745_s12  ;;  %16 = sbr.rel (!%p14_p8) target bundleno = 5 (0x5), region = 69 }
 0x12e   :  { %428 = vsyncpa [#allocation3], 1 }
 0x12f   :  { %430 = vsyncpa [#allocation3 + $0x1], 1 }
 0x130   :  { %431 = vsyncpa [#allocation4], 1 }
 0x131   :  { %433 = vsyncpa [#allocation4 + $0x1], 1 }

</bundles_post_ra>
